<compile_context>
chip_gen: v5e
topology: v5e:2x2
jax: 0.10.0
libtpu: 0.0.40
codegen_flags: <defaults>
</compile_context>

<pallas_src>
from functools import partial

import jax
import jax.numpy as jnp
from jax.experimental import pallas as pl
from jax.experimental.pallas import tpu as pltpu


_MASK_BIG = 1e30  # large finite negative bias magnitude; exp(-1e30) underflows to 0.


# =====================  Pallas kernel  =====================

def _full_attention_kernel(*refs, scale, use_mask):
    """One (batch, L-tile, S-tile) step per invocation; online softmax over the S axis.

    Refs (use_mask=True):  q (1,H,TL,D), k (1,H,TS,D), v (1,H,TS,D),
                           q_mask (1,TL,1), kv_mask (1,1,TS), out (1,H,TL,D),
                           m_sc (H,TL,1), l_sc (H,TL,1), acc_sc (H,TL,D)
    Refs (use_mask=False): q, k, v, out, m_sc, l_sc, acc_sc
    """
    if use_mask:
        q_ref, k_ref, v_ref, qm_ref, kvm_ref, o_ref, m_sc, l_sc, acc_sc = refs
    else:
        q_ref, k_ref, v_ref, o_ref, m_sc, l_sc, acc_sc = refs

    si = pl.program_id(2)

    @pl.when(si == 0)
    def _init():
        m_sc[...] = jnp.full(m_sc.shape, -jnp.inf, dtype=m_sc.dtype)
        l_sc[...] = jnp.zeros(l_sc.shape, dtype=l_sc.dtype)
        acc_sc[...] = jnp.zeros(acc_sc.shape, dtype=acc_sc.dtype)

    # Scale Q (H*TL*D multiplies) instead of the (H, TL, TS) score tensor; stays in the
    # input dtype so bf16 inputs keep the bf16 MXU path for the QK matmul.
    q = q_ref[0] * scale                          # (H, TL, D)
    k = k_ref[0]                                  # (H, TS, D)
    v = v_ref[0]                                  # (H, TS, D)

    # Scores for ALL heads in one batched MXU matmul, f32 accumulation.
    s = jnp.einsum('hld,hsd->hls', q, k,
                   preferred_element_type=jnp.float32)      # (H, TL, TS)

    if use_mask:
        # Additive-bias form of masked_fill(-inf): two broadcast adds, no (TL,TS) select,
        # large finite negative so fully-masked rows stay NaN-free.
        s = (s
             + (qm_ref[...] - 1.0) * _MASK_BIG               # (1, TL, 1) -> 0 / -BIG
             + (kvm_ref[...] - 1.0) * _MASK_BIG)             # (1, 1, TS) -> 0 / -BIG

    # Online (flash) softmax update over the S-tile axis.
    m_prev = m_sc[...]                                       # (H, TL, 1)
    m_new = jnp.maximum(m_prev, jnp.max(s, axis=-1, keepdims=True))
    alpha = jnp.exp(m_prev - m_new)                          # rescale factor for old stats
    p = jnp.exp(s - m_new)                                   # (H, TL, TS) f32

    l_sc[...] = alpha * l_sc[...] + jnp.sum(p, axis=-1, keepdims=True)
    # Cast probabilities to V's dtype so bf16 inputs use the fast bf16 MXU path for PV.
    acc_sc[...] = alpha * acc_sc[...] + jnp.einsum(
        'hls,hsd->hld', p.astype(v.dtype), v, preferred_element_type=jnp.float32)
    m_sc[...] = m_new

    @pl.when(si == pl.num_programs(2) - 1)
    def _finalize():
        inv_l = pl.reciprocal(l_sc[...], approx=True)        # EUP slot, ~free
        o_ref[0] = (acc_sc[...] * inv_l).astype(o_ref.dtype)


# =====================  wrapper  =====================

def _pick_tile(total, preferred, multiple):
    """Largest tile <= preferred that divides `total` and is a multiple of `multiple`;
    falls back to the full extent (always legal per the (8,128) BlockSpec rule)."""
    if total <= preferred:
        return total
    t = (preferred // multiple) * multiple
    while t >= multiple:
        if total % t == 0:
            return t
        t -= multiple
    return total


def full_attention(queries, keys, values, q_mask=None, kv_mask=None):
    """queries: (N, L, H, D), keys/values: (N, S, H, D), masks: (N, L) / (N, S) bool.

    Returns (N, L, H, D), matching FullAttention.forward.
    """
    N, L, H, D = queries.shape
    S = keys.shape[1]
    scale = 1.0 / float(D) ** 0.5
    use_mask = (q_mask is not None) or (kv_mask is not None)

    # One XLA transpose outside the kernel -> kernel refs are natively (H, T, D), so there
    # is no per-head lane slicing / stacking / concatenation inside the kernel.
    q_t = jnp.transpose(queries, (0, 2, 1, 3))   # (N, H, L, D)
    k_t = jnp.transpose(keys, (0, 2, 1, 3))      # (N, H, S, D)
    v_t = jnp.transpose(values, (0, 2, 1, 3))    # (N, H, S, D)

    # Tile L (parallel axis, keeps both v7x TCs busy at small N) and S (flash reduction
    # axis, bounds the f32 score live range).  Mask blocks put S on lanes -> 128-multiple.
    TL = _pick_tile(L, 256, 8)
    TS = _pick_tile(S, 512, 128 if use_mask else 8)
    grid = (N, L // TL, S // TS)

    in_specs = [
        pl.BlockSpec((1, H, TL, D), lambda n, li, si: (n, 0, li, 0)),
        pl.BlockSpec((1, H, TS, D), lambda n, li, si: (n, 0, si, 0)),
        pl.BlockSpec((1, H, TS, D), lambda n, li, si: (n, 0, si, 0)),
    ]
    inputs = [q_t, k_t, v_t]

    if use_mask:
        qm = (jnp.ones((N, L), jnp.float32) if q_mask is None
              else q_mask.astype(jnp.float32)).reshape(N, L, 1)   # L on sublanes
        kvm = (jnp.ones((N, S), jnp.float32) if kv_mask is None
               else kv_mask.astype(jnp.float32)).reshape(N, 1, S)  # S on lanes
        inputs += [qm, kvm]
        in_specs += [
            pl.BlockSpec((1, TL, 1), lambda n, li, si: (n, li, 0)),
            pl.BlockSpec((1, 1, TS), lambda n, li, si: (n, 0, si)),
        ]

    # VMEM budget: double-buffered I/O blocks + f32 scratch + f32 score tile.  Cap below
    # v7x's 64 MiB physical VMEM; floor at the 32 MiB default scoped limit.
    itemsize = jnp.dtype(queries.dtype).itemsize
    io_blk = 2 * itemsize * (2 * H * TL * D + 2 * H * TS * D)       # q+out, k+v (dbl-buf)
    if use_mask:
        io_blk += 2 * 4 * (TL + TS)
    scratch = 4 * (2 * H * TL + H * TL * D)                         # m, l, acc
    score = 4 * H * TL * TS                                         # f32 score tile
    vmem_limit = int(min(60 * 2 ** 20, max(32 * 2 ** 20, 2 * (io_blk + scratch + score))))

    bytes_accessed = itemsize * (2 * N * H * L * D + 2 * N * H * S * D)
    if use_mask:
        bytes_accessed += 4 * (N * L + N * S)

    out = pl.pallas_call(
        partial(_full_attention_kernel, scale=scale, use_mask=use_mask),
        grid=grid,
        in_specs=in_specs,
        out_specs=pl.BlockSpec((1, H, TL, D), lambda n, li, si: (n, 0, li, 0)),
        out_shape=jax.ShapeDtypeStruct((N, H, L, D), queries.dtype),
        scratch_shapes=[
            pltpu.VMEM((H, TL, 1), jnp.float32),   # running max
            pltpu.VMEM((H, TL, 1), jnp.float32),   # running denom
            pltpu.VMEM((H, TL, D), jnp.float32),   # running output accumulator
        ],
        compiler_params=pltpu.CompilerParams(
            dimension_semantics=("parallel", "parallel", "arbitrary"),
            vmem_limit_bytes=vmem_limit),
        cost_estimate=pl.CostEstimate(
            flops=4 * N * H * L * S * D,
            transcendentals=N * H * L * S,
            bytes_accessed=int(bytes_accessed)),
    )(*inputs)

    return jnp.transpose(out, (0, 2, 1, 3))       # back to (N, L, H, D)


# =====================  pure-JAX reference (for the self-check)  =====================

def _reference(q, k, v, q_mask=None, kv_mask=None):
    qk = jnp.einsum('nlhd,nshd->nlsh', q, k)
    if kv_mask is not None:
        valid = q_mask[:, :, None, None] & kv_mask[:, None, :, None]
        qk = jnp.where(valid, qk, -jnp.inf)
    temp = 1.0 / q.shape[3] ** 0.5
    a = jax.nn.softmax(temp * qk, axis=2)
    return jnp.einsum('nlsh,nshd->nlhd', a, v)


# =====================  main  =====================

if __name__ == "__main__":
    key = jax.random.PRNGKey(0)
    kq, kk, kvk = jax.random.split(key, 3)

    N, L, S, H, D = 2, 8, 8, 4, 8          # queries (N,L,H,D), keys/values (N,S,H,D)
    q = jax.random.normal(kq, (N, L, H, D), jnp.float32)
    k = jax.random.normal(kk, (N, S, H, D), jnp.float32)
    v = jax.random.normal(kvk, (N, S, H, D), jnp.float32)

    # Boolean masks (no fully-masked query row, so outputs stay finite like PyTorch).
    q_mask = jnp.ones((N, L), dtype=bool)
    kv_mask = jnp.ones((N, S), dtype=bool).at[1, S - 2:].set(False)

    attn = jax.jit(full_attention)

    # masked path
    out = jax.block_until_ready(attn(q, k, v, q_mask, kv_mask))
    assert out.shape == (N, L, H, D), out.shape
    assert bool(jnp.all(jnp.isfinite(out)))
    ref = _reference(q, k, v, q_mask, kv_mask)
    assert bool(jnp.allclose(out, ref, atol=2e-2, rtol=2e-2)), \
        float(jnp.max(jnp.abs(out - ref)))

    # mask-free path (q_mask=None, kv_mask=None)
    out2 = jax.block_until_ready(attn(q, k, v))
    ref2 = _reference(q, k, v)
    assert bool(jnp.allclose(out2, ref2, atol=2e-2, rtol=2e-2))

    print("KERNEL_OK")
</pallas_src>

<mosaic_0001>
module attributes {stable_mosaic.version = 11 : i64} {
  func.func @_full_attention_kernel(%arg0: i32, %arg1: i32, %arg2: i32, %arg3: memref<1x4x8x8xf32, #tpu.memory_space<vmem>>, %arg4: memref<1x4x8x8xf32, #tpu.memory_space<vmem>>, %arg5: memref<1x4x8x8xf32, #tpu.memory_space<vmem>>, %arg6: memref<1x8x1xf32, #tpu.memory_space<vmem>>, %arg7: memref<1x1x8xf32, #tpu.memory_space<vmem>>, %arg8: memref<1x4x8x8xf32, #tpu.memory_space<vmem>>, %arg9: memref<4x8x1xf32, #tpu.memory_space<vmem>>, %arg10: memref<4x8x1xf32, #tpu.memory_space<vmem>>, %arg11: memref<4x8x8xf32, #tpu.memory_space<vmem>>) attributes {dimension_semantics = [#tpu.dimension_semantics<parallel>, #tpu.dimension_semantics<parallel>, #tpu.dimension_semantics<arbitrary>], iteration_bounds = array<i64: 2, 1, 1>, scalar_prefetch = 0 : i64, scratch_operands = 3 : i64, tpu.core_type = #tpu.core_type<tc>, window_params = [{transform_indices = @transform_0, window_bounds = array<i64: 1, 4, 8, 8>}, {transform_indices = @transform_1, window_bounds = array<i64: 1, 4, 8, 8>}, {transform_indices = @transform_2, window_bounds = array<i64: 1, 4, 8, 8>}, {transform_indices = @transform_3, window_bounds = array<i64: 1, 8, 1>}, {transform_indices = @transform_4, window_bounds = array<i64: 1, 1, 8>}, {transform_indices = @transform_5, window_bounds = array<i64: 1, 4, 8, 8>}]} {
    %c0_i32 = arith.constant 0 : i32
    %0 = arith.cmpi eq, %arg2, %c0_i32 : i32
    %1 = arith.extui %0 : i1 to i32
    %c0_i32_0 = arith.constant 0 : i32
    %2 = arith.cmpi ne, %1, %c0_i32_0 : i32
    scf.if %2 {
      %cst_46 = arith.constant 0xFF800000 : f32
      %51 = vector.broadcast %cst_46 : f32 to vector<4x8x1xf32>
      %c0_47 = arith.constant 0 : index
      %c0_48 = arith.constant 0 : index
      %c0_49 = arith.constant 0 : index
      %52 = vector.load %arg9[%c0_47, %c0_48, %c0_49] : memref<4x8x1xf32, #tpu.memory_space<vmem>>, vector<4x8x1xf32>
      tpu.vector_store %arg9[%c0_47, %c0_48, %c0_49], %51 {strides = array<i32>} : memref<4x8x1xf32, #tpu.memory_space<vmem>>, vector<4x8x1xf32>,
      %cst_50 = arith.constant 0.000000e+00 : f32
      %53 = vector.broadcast %cst_50 : f32 to vector<4x8x1xf32>
      %c0_51 = arith.constant 0 : index
      %c0_52 = arith.constant 0 : index
      %c0_53 = arith.constant 0 : index
      %54 = vector.load %arg10[%c0_51, %c0_52, %c0_53] : memref<4x8x1xf32, #tpu.memory_space<vmem>>, vector<4x8x1xf32>
      tpu.vector_store %arg10[%c0_51, %c0_52, %c0_53], %53 {strides = array<i32>} : memref<4x8x1xf32, #tpu.memory_space<vmem>>, vector<4x8x1xf32>,
      %cst_54 = arith.constant 0.000000e+00 : f32
      %55 = vector.broadcast %cst_54 : f32 to vector<4x8x8xf32>
      %c0_55 = arith.constant 0 : index
      %c0_56 = arith.constant 0 : index
      %c0_57 = arith.constant 0 : index
      %56 = vector.load %arg11[%c0_55, %c0_56, %c0_57] : memref<4x8x8xf32, #tpu.memory_space<vmem>>, vector<4x8x8xf32>
      tpu.vector_store %arg11[%c0_55, %c0_56, %c0_57], %55 {strides = array<i32>} : memref<4x8x8xf32, #tpu.memory_space<vmem>>, vector<4x8x8xf32>,
    } else {
    }
    %c0 = arith.constant 0 : index
    %c0_1 = arith.constant 0 : index
    %c0_2 = arith.constant 0 : index
    %c0_3 = arith.constant 0 : index
    %3 = vector.load %arg3[%c0, %c0_1, %c0_2, %c0_3] : memref<1x4x8x8xf32, #tpu.memory_space<vmem>>, vector<1x4x8x8xf32>
    %4 = vector.shape_cast %3 : vector<1x4x8x8xf32> to vector<4x8x8xf32>
    %cst = arith.constant 0.353553385 : f32
    %5 = vector.broadcast %cst : f32 to vector<4x8x8xf32>
    %6 = arith.mulf %4, %5 : vector<4x8x8xf32>
    %c0_4 = arith.constant 0 : index
    %c0_5 = arith.constant 0 : index
    %c0_6 = arith.constant 0 : index
    %c0_7 = arith.constant 0 : index
    %7 = vector.load %arg4[%c0_4, %c0_5, %c0_6, %c0_7] : memref<1x4x8x8xf32, #tpu.memory_space<vmem>>, vector<1x4x8x8xf32>
    %8 = vector.shape_cast %7 : vector<1x4x8x8xf32> to vector<4x8x8xf32>
    %c0_8 = arith.constant 0 : index
    %c0_9 = arith.constant 0 : index
    %c0_10 = arith.constant 0 : index
    %c0_11 = arith.constant 0 : index
    %9 = vector.load %arg5[%c0_8, %c0_9, %c0_10, %c0_11] : memref<1x4x8x8xf32, #tpu.memory_space<vmem>>, vector<1x4x8x8xf32>
    %10 = vector.shape_cast %9 : vector<1x4x8x8xf32> to vector<4x8x8xf32>
    "tpu.trace_start"() <{level = 10 : i32, message = "hld,hsd->hls"}> : () -> ()
    %cst_12 = arith.constant dense<0.000000e+00> : vector<4x8x8xf32>
    %11 = tpu.matmul %6, %8, %cst_12 {dimension_numbers = #tpu.dot_dimension_numbers<[2], [2], [1], [1], [0, 0, 0, 1, 1, 1], [0], [0]>} : vector<4x8x8xf32>, vector<4x8x8xf32>, vector<4x8x8xf32> -> vector<4x8x8xf32>
    "tpu.trace_stop"() : () -> ()
    %c0_13 = arith.constant 0 : index
    %c0_14 = arith.constant 0 : index
    %c0_15 = arith.constant 0 : index
    %12 = vector.load %arg6[%c0_13, %c0_14, %c0_15] : memref<1x8x1xf32, #tpu.memory_space<vmem>>, vector<1x8x1xf32>
    %cst_16 = arith.constant 1.000000e+00 : f32
    %13 = vector.broadcast %cst_16 : f32 to vector<1x8x1xf32>
    %14 = arith.subf %12, %13 : vector<1x8x1xf32>
    %cst_17 = arith.constant 1.000000e+30 : f32
    %15 = vector.broadcast %cst_17 : f32 to vector<1x8x1xf32>
    %16 = arith.mulf %14, %15 : vector<1x8x1xf32>
    %17 = vector.broadcast %16 : vector<1x8x1xf32> to vector<4x8x8xf32>
    %18 = arith.addf %11, %17 : vector<4x8x8xf32>
    %c0_18 = arith.constant 0 : index
    %c0_19 = arith.constant 0 : index
    %c0_20 = arith.constant 0 : index
    %19 = vector.load %arg7[%c0_18, %c0_19, %c0_20] : memref<1x1x8xf32, #tpu.memory_space<vmem>>, vector<1x1x8xf32>
    %cst_21 = arith.constant 1.000000e+00 : f32
    %20 = vector.broadcast %cst_21 : f32 to vector<1x1x8xf32>
    %21 = arith.subf %19, %20 : vector<1x1x8xf32>
    %cst_22 = arith.constant 1.000000e+30 : f32
    %22 = vector.broadcast %cst_22 : f32 to vector<1x1x8xf32>
    %23 = arith.mulf %21, %22 : vector<1x1x8xf32>
    %24 = vector.broadcast %23 : vector<1x1x8xf32> to vector<4x8x8xf32>
    %25 = arith.addf %18, %24 : vector<4x8x8xf32>
    %c0_23 = arith.constant 0 : index
    %c0_24 = arith.constant 0 : index
    %c0_25 = arith.constant 0 : index
    %26 = vector.load %arg9[%c0_23, %c0_24, %c0_25] : memref<4x8x1xf32, #tpu.memory_space<vmem>>, vector<4x8x1xf32>
    %cst_26 = arith.constant dense<0xFF800000> : vector<4x8xf32>
    %27 = vector.multi_reduction <maximumf>, %25, %cst_26 [2] : vector<4x8x8xf32> to vector<4x8xf32>
    %28 = vector.shape_cast %27 : vector<4x8xf32> to vector<4x8x1xf32>
    %29 = arith.maximumf %26, %28 : vector<4x8x1xf32>
    %30 = arith.subf %26, %29 : vector<4x8x1xf32>
    %31 = math.exp %30 : vector<4x8x1xf32>
    %32 = vector.broadcast %29 : vector<4x8x1xf32> to vector<4x8x8xf32>
    %33 = arith.subf %25, %32 : vector<4x8x8xf32>
    %34 = math.exp %33 : vector<4x8x8xf32>
    %c0_27 = arith.constant 0 : index
    %c0_28 = arith.constant 0 : index
    %c0_29 = arith.constant 0 : index
    %35 = vector.load %arg10[%c0_27, %c0_28, %c0_29] : memref<4x8x1xf32, #tpu.memory_space<vmem>>, vector<4x8x1xf32>
    %36 = arith.mulf %31, %35 : vector<4x8x1xf32>
    %cst_30 = arith.constant dense<0.000000e+00> : vector<4x8xf32>
    %37 = vector.multi_reduction <add>, %34, %cst_30 [2] : vector<4x8x8xf32> to vector<4x8xf32>
    %38 = vector.shape_cast %37 : vector<4x8xf32> to vector<4x8x1xf32>
    %39 = arith.addf %36, %38 : vector<4x8x1xf32>
    %c0_31 = arith.constant 0 : index
    %c0_32 = arith.constant 0 : index
    %c0_33 = arith.constant 0 : index
    %40 = vector.load %arg10[%c0_31, %c0_32, %c0_33] : memref<4x8x1xf32, #tpu.memory_space<vmem>>, vector<4x8x1xf32>
    tpu.vector_store %arg10[%c0_31, %c0_32, %c0_33], %39 {strides = array<i32>} : memref<4x8x1xf32, #tpu.memory_space<vmem>>, vector<4x8x1xf32>,
    %c0_34 = arith.constant 0 : index
    %c0_35 = arith.constant 0 : index
    %c0_36 = arith.constant 0 : index
    %41 = vector.load %arg11[%c0_34, %c0_35, %c0_36] : memref<4x8x8xf32, #tpu.memory_space<vmem>>, vector<4x8x8xf32>
    %42 = vector.broadcast %31 : vector<4x8x1xf32> to vector<4x8x8xf32>
    %43 = arith.mulf %42, %41 : vector<4x8x8xf32>
    "tpu.trace_start"() <{level = 10 : i32, message = "hls,hsd->hld"}> : () -> ()
    %cst_37 = arith.constant dense<0.000000e+00> : vector<4x8x8xf32>
    %44 = tpu.matmul %34, %10, %cst_37 {dimension_numbers = #tpu.dot_dimension_numbers<[2], [1], [1], [2], [0, 0, 0, 1, 1, 2], [0], [0]>} : vector<4x8x8xf32>, vector<4x8x8xf32>, vector<4x8x8xf32> -> vector<4x8x8xf32>
    "tpu.trace_stop"() : () -> ()
    %45 = arith.addf %43, %44 : vector<4x8x8xf32>
    %c0_38 = arith.constant 0 : index
    %c0_39 = arith.constant 0 : index
    %c0_40 = arith.constant 0 : index
    %46 = vector.load %arg11[%c0_38, %c0_39, %c0_40] : memref<4x8x8xf32, #tpu.memory_space<vmem>>, vector<4x8x8xf32>
    tpu.vector_store %arg11[%c0_38, %c0_39, %c0_40], %45 {strides = array<i32>} : memref<4x8x8xf32, #tpu.memory_space<vmem>>, vector<4x8x8xf32>,
    %c0_41 = arith.constant 0 : index
    %c0_42 = arith.constant 0 : index
    %c0_43 = arith.constant 0 : index
    %47 = vector.load %arg9[%c0_41, %c0_42, %c0_43] : memref<4x8x1xf32, #tpu.memory_space<vmem>>, vector<4x8x1xf32>
    tpu.vector_store %arg9[%c0_41, %c0_42, %c0_43], %29 {strides = array<i32>} : memref<4x8x1xf32, #tpu.memory_space<vmem>>, vector<4x8x1xf32>,
    %c0_i32_44 = arith.constant 0 : i32
    %48 = arith.cmpi eq, %arg2, %c0_i32_44 : i32
    %49 = arith.extui %48 : i1 to i32
    %c0_i32_45 = arith.constant 0 : i32
    %50 = arith.cmpi ne, %49, %c0_i32_45 : i32
    scf.if %50 {
      %c0_46 = arith.constant 0 : index
      %c0_47 = arith.constant 0 : index
      %c0_48 = arith.constant 0 : index
      %51 = vector.load %arg10[%c0_46, %c0_47, %c0_48] : memref<4x8x1xf32, #tpu.memory_space<vmem>>, vector<4x8x1xf32>
      %52 = tpu.reciprocal %51 {approx = true} : vector<4x8x1xf32> -> vector<4x8x1xf32>
      %c0_49 = arith.constant 0 : index
      %c0_50 = arith.constant 0 : index
      %c0_51 = arith.constant 0 : index
      %53 = vector.load %arg11[%c0_49, %c0_50, %c0_51] : memref<4x8x8xf32, #tpu.memory_space<vmem>>, vector<4x8x8xf32>
      %54 = vector.broadcast %52 : vector<4x8x1xf32> to vector<4x8x8xf32>
      %55 = arith.mulf %53, %54 : vector<4x8x8xf32>
      %c0_52 = arith.constant 0 : index
      %c0_53 = arith.constant 0 : index
      %c0_54 = arith.constant 0 : index
      %c0_55 = arith.constant 0 : index
      %56 = vector.load %arg8[%c0_52, %c0_53, %c0_54, %c0_55] : memref<1x4x8x8xf32, #tpu.memory_space<vmem>>, vector<1x4x8x8xf32>
      %57 = vector.shape_cast %56 : vector<1x4x8x8xf32> to vector<4x8x8xf32>
      %58 = vector.shape_cast %55 : vector<4x8x8xf32> to vector<1x4x8x8xf32>
      tpu.vector_store %arg8[%c0_52, %c0_53, %c0_54, %c0_55], %58 {strides = array<i32>} : memref<1x4x8x8xf32, #tpu.memory_space<vmem>>, vector<1x4x8x8xf32>,
    } else {
    }
    return
  }
  func.func @transform_0(%arg0: i32, %arg1: i32, %arg2: i32) -> (i32, i32, i32, i32) {
    %c0_i32 = arith.constant 0 : i32
    %c0_i32_0 = arith.constant 0 : i32
    %c0_i32_1 = arith.constant 0 : i32
    return %arg0, %c0_i32, %arg1, %c0_i32_0 : i32, i32, i32, i32
  }
  func.func @transform_1(%arg0: i32, %arg1: i32, %arg2: i32) -> (i32, i32, i32, i32) {
    %c0_i32 = arith.constant 0 : i32
    %c0_i32_0 = arith.constant 0 : i32
    %c0_i32_1 = arith.constant 0 : i32
    return %arg0, %c0_i32, %arg2, %c0_i32_0 : i32, i32, i32, i32
  }
  func.func @transform_2(%arg0: i32, %arg1: i32, %arg2: i32) -> (i32, i32, i32, i32) {
    %c0_i32 = arith.constant 0 : i32
    %c0_i32_0 = arith.constant 0 : i32
    %c0_i32_1 = arith.constant 0 : i32
    return %arg0, %c0_i32, %arg2, %c0_i32_0 : i32, i32, i32, i32
  }
  func.func @transform_3(%arg0: i32, %arg1: i32, %arg2: i32) -> (i32, i32, i32) {
    %c0_i32 = arith.constant 0 : i32
    %c0_i32_0 = arith.constant 0 : i32
    return %arg0, %arg1, %c0_i32 : i32, i32, i32
  }
  func.func @transform_4(%arg0: i32, %arg1: i32, %arg2: i32) -> (i32, i32, i32) {
    %c0_i32 = arith.constant 0 : i32
    %c0_i32_0 = arith.constant 0 : i32
    return %arg0, %c0_i32, %arg2 : i32, i32, i32
  }
  func.func @transform_5(%arg0: i32, %arg1: i32, %arg2: i32) -> (i32, i32, i32, i32) {
    %c0_i32 = arith.constant 0 : i32
    %c0_i32_0 = arith.constant 0 : i32
    %c0_i32_1 = arith.constant 0 : i32
    return %arg0, %c0_i32, %arg1, %c0_i32_0 : i32, i32, i32, i32
  }
}

</mosaic_0001>

<bundles_post_ra>
// kernel: full_attention.1
= control target key start
LH: loop header
LB: loop body
LE: loop exit
PB: predicated region body
PF: predicated region fallthrough
CT: control target
= control target key end

     0   :  { %s1097_s18 = smov 0   ;;  %s1099_s19 = smov 0   ;;  %s1230_s0 = inlined_call_operand.vmem [shape: f32[2,4,8,8], index: 0, kind: input, shape index: {}]   ;;  %s1231_s1 = inlined_call_operand.vmem [shape: f32[2,4,8,8], index: 1, kind: input, shape index: {}]   ;;  %s1232_s2 = inlined_call_operand.vmem [shape: f32[2,4,8,8], index: 2, kind: input, shape index: {}]   ;;  %s1233_s3 = inlined_call_operand.vmem [shape: f32[2,8,1], index: 3, kind: input, shape index: {}]   ;;  %s1234_s4 = inlined_call_operand.vmem [shape: f32[2,1,8], index: 4, kind: input, shape index: {}]   ;;  %s1235_s5 = inlined_call_operand.vmem [shape: f32[2,4,8,8], index: 5, kind: output, shape index: {}]  }
   0x1   :  { %s1101_s20 = smov 0  }
   0x2 LB: > { %s34_s21 = sadd.s32 1, %s1058_s19  ;;  %p956_p0 = scmp.ge.s32.totalorder %s1062_s20, 1  ;;  %s1062_s20 = sphi %s1101_s20, %s15_s20   ;;  %s1058_s19 = sphi %s1099_s19, %s1237_s19   ;;  %s1054_s18 = sphi %s1097_s18, %s1236_s18  }
   0x3   : > { %p36_p1 = scmp.ge.s32.totalorder %s34_s21, 2  ;;  %p270_p2 = scmp.lt.s32.totalorder %s1062_s20, 3 }
   0x5   : > { %s1239_s21 = smov (%p36_p1, %s34_s21), 0  ;;  %p271_p3 = pnand %p956_p0, %p270_p2 }
   0x6   : > { %p333_p4 = scmp.lt.s32.totalorder (!%p271_p3), %s1054_s18, 1 }
   0x7   : > { %274 = sbr.rel (%p271_p3) target bundleno = 654 (0x28e), region = 40 }
   0xc   : > { %v1064_v0 = vmov 0   ;;  %s1241_s18 = smov (!%p333_p4, %s1054_s18), 1  ;;  %vm391_vm0 = vcmask 64512   ;;  %vm382_vm1 = vcmask 7168   ;;  %v1065_v16 = vmov -inf  }
   0xd   : > { %1013 = vset.pattern.permute.xlu0 %v1064_v0  ;;  %1014 = vset.pattern.permute.xlu2 %v1064_v0  ;;  %s1118_s22 = sshll.u32 %s1241_s18, 5  ;;  %s963_s23 = sshll.u32 %s1241_s18, 3  ;;  %384 = vst.msk [vmem:[#allocation2 + $0x8] sm:$0xff] %vm382_vm1, %v1065_v16  ;;  %v1066_v38 = vmov 0.0  }
   0xe   : > { %1015 = vset.pattern.permute.xlu1 %v1064_v0  ;;  %s348_s26 = scalar_lea.vmem %s1231_s1, %s1118_s22  ;;  %s340_s29 = scalar_lea.vmem %s1230_s0, %s1118_s22  ;;  %383 = vst.msk [vmem:[#allocation2] sm:$0xff] %vm382_vm1, %v1065_v16 }
   0xf   : > { %v404_v1 = vld [vmem:[%s348_s26] sm:$0xff]  ;;  %v405_v2 = vld [vmem:[%s348_s26 + $0x8] sm:$0xff]  ;;  %v406_v3 = vld [vmem:[%s348_s26 + $0x10] sm:$0xff]  ;;  %s363_s7 = scalar_lea.vmem %s1233_s3, %s963_s23  ;;  %s369_s10 = scalar_lea.vmem %s1234_s4, %s1241_s18  ;;  %385 = vst.msk [vmem:[#allocation2 + $0x10] sm:$0xff] %vm382_vm1, %v1065_v16 }
  0x10   : > { %967 = vmatpush.xpose.msk.msra.mxu0 %vm391_vm0, %v404_v1  ;;  %969 = vmatpush.xpose.msk.msra.mxu1 %vm391_vm0, %v405_v2  ;;  %v407_v4 = vld [vmem:[%s348_s26 + $0x18] sm:$0xff]  ;;  %v396_v5 = vld [vmem:[%s340_s29] sm:$0xff]  ;;  %v397_v6 = vld [vmem:[%s340_s29 + $0x8] sm:$0xff]  ;;  %386 = vst.msk [vmem:[#allocation2 + $0x18] sm:$0xff] %vm382_vm1, %v1065_v16  ;;  %s356_s13 = scalar_lea.vmem %s1232_s2, %s1118_s22  ;;  %s377_s16 = scalar_lea.vmem %s1235_s5, %s1118_s22 }
  0x11   : > { %971 = vmatpush.xpose.msk.msra.mxu2 %vm391_vm0, %v406_v3  ;;  %973 = vmatpush.xpose.msk.msra.mxu3 %vm391_vm0, %v407_v4  ;;  %v400_v7 = vmul.f32 0.35355338, %v396_v5  ;;  %v401_v8 = vmul.f32 0.35355338, %v397_v6  ;;  %v398_v9 = vld [vmem:[%s340_s29 + $0x10] sm:$0xff]  ;;  %v399_v10 = vld [vmem:[%s340_s29 + $0x18] sm:$0xff] }
  0x12   : > { %v402_v11 = vmul.f32 0.35355338, %v398_v9  ;;  %v403_v12 = vmul.f32 0.35355338, %v399_v10  ;;  %v412_v13 = vld [vmem:[%s363_s7] sm:$0xff]  ;;  %392 = vst.msk [vmem:[#allocation4] sm:$0xff] %vm391_vm0, %v1066_v38 }
  0x13   : > { %968 = vmatmul.msk.f32.vlgmr.msra.gmra.mxu0 %vm391_vm0, %v400_v7  ;;  %970 = vmatmul.msk.f32.vlgmr.msra.gmra.mxu1 %vm391_vm0, %v401_v8  ;;  %v966_v14 = vadd.f32 -1.0, %v412_v13  ;;  %v525_v17 = vld [vmem:[%s369_s10] sm:$0x1]  ;;  %387 = vst.msk [vmem:[#allocation3] sm:$0xff] %vm382_vm1, %v1066_v38  ;;  %v410_v59 = vld [vmem:[%s356_s13 + $0x10] sm:$0xff]  ;;  %v409_v61 = vld [vmem:[%s356_s13 + $0x8] sm:$0xff] }
  0x14   : > { %972 = vmatmul.msk.f32.vlgmr.msra.gmra.mxu2 %vm391_vm0, %v402_v11  ;;  %974 = vmatmul.msk.f32.vlgmr.msra.gmra.mxu3 %vm391_vm0, %v403_v12  ;;  %v975_v18 = vadd.f32 -1.0, %v525_v17  ;;  %388 = vst.msk [vmem:[#allocation3 + $0x8] sm:$0xff] %vm382_vm1, %v1066_v38  ;;  %v1169_v39 = vld [vmem:[#allocation2 + $0x8] sm:$0xff]  ;;  %v408_v60 = vld [vmem:[%s356_s13] sm:$0xff]  ;;  %v411_v62 = vld [vmem:[%s356_s13 + $0x18] sm:$0xff] }
  0x15   : > { %v414_v15 = vmul.f32 1e+30, %v966_v14  ;;  %389 = vst.msk [vmem:[#allocation3 + $0x10] sm:$0xff] %vm382_vm1, %v1066_v38  ;;  %v535_v40 = vld [vmem:[#allocation2] sm:$0xff]  ;;  %720 = vmatpush.msrb.mxu2 %v410_v59  ;;  %674 = vmatpush.msrb.mxu0 %v408_v60 }
  0x16   : > { %v527_v19 = vmul.f32 1e+30, %v975_v18  ;;  %390 = vst.msk [vmem:[#allocation3 + $0x18] sm:$0xff] %vm382_vm1, %v1066_v38  ;;  %v537_v48 = vld [vmem:[#allocation2 + $0x10] sm:$0xff]  ;;  %697 = vmatpush.msrb.mxu1 %v409_v61  ;;  %743 = vmatpush.msrb.mxu3 %v411_v62 }
  0x17   : > { %417 = vperm.xlu0 %1013, %v414_v15   ;;  %393 = vst.msk [vmem:[#allocation4 + $0x8] sm:$0xff] %vm391_vm0, %v1066_v38  ;;  %v1179_v49 = vld [vmem:[#allocation2 + $0x18] sm:$0xff] }
  0x18   : > { %v529_v21 = vperm.slane %v527_v19, 0  ;;  %394 = vst.msk [vmem:[#allocation4 + $0x10] sm:$0xff] %vm391_vm0, %v1066_v38 }
  0x19   : > { %395 = vst.msk [vmem:[#allocation4 + $0x18] sm:$0xff] %vm391_vm0, %v1066_v38 }
  0x20   : > { %v631_v61 = vld [vmem:[#allocation4 + $0x18] sm:$0xff] }
  0x89   : > { %v418_v20 = vpop.permute.xlu0 %417 }
  0x90   : > { %v444_v22 = vpop.f32.mrf.mxu0  ;;  %v470_v23 = vpop.f32.mrf.mxu1 }
  0x91   : > { %v445_v24 = vadd.f32 %v444_v22, %v418_v20  ;;  %v471_v25 = vadd.f32 %v470_v23, %v418_v20 }
  0x93   : > { %v1148_v26 = vadd.f32 %v529_v21, %v471_v25  ;;  %v1150_v27 = vadd.f32 %v529_v21, %v445_v24  ;;  %v601_v25 = vld [vmem:[#allocation3 + $0x10] sm:$0xff] }
  0x95   : > { %v542_v28 = vsel %vm391_vm0, %v1148_v26, -inf  ;;  %v539_v29 = vsel %vm391_vm0, %v1150_v27, -inf }
  0x96   : > { %543 = vmax.xlane.f32.xlu2 %v542_v28  ;;  %540 = vmax.xlane.f32.xlu1 %v539_v29  ;;  %v599_v29 = vld [vmem:[#allocation3] sm:$0xff] }
  0x97   : > { %v496_v30 = vpop.f32.mrf.mxu2  ;;  %v522_v31 = vpop.f32.mrf.mxu3 }
  0x98   : > { %v497_v32 = vadd.f32 %v496_v30, %v418_v20  ;;  %v523_v33 = vadd.f32 %v522_v31, %v418_v20 }
  0x9a   : > { %v533_v34 = vadd.f32 %v529_v21, %v497_v32  ;;  %v1156_v35 = vadd.f32 %v529_v21, %v523_v33 }
  0x9c   : > { %v545_v36 = vsel %vm391_vm0, %v533_v34, -inf  ;;  %v548_v37 = vsel %vm391_vm0, %v1156_v35, -inf }
  0x9d   : > { %546 = vmax.xlane.f32.xlu0 %v545_v36  ;;  %v628_v36 = vld [vmem:[#allocation4] sm:$0xff] }
  0x9e   : > { %549 = vmax.xlane.f32.xlu1 %v548_v37 }
 0x109   : > { %v544_v41 = vpop.xlane.xlu2 %543  ;;  %v541_v42 = vpop.xlane.xlu1 %540 }
 0x10a   : > { %v1172_v43 = vmax.f32 %v1169_v39, %v544_v41  ;;  %v551_v44 = vmax.f32 %v535_v40, %v541_v42 }
 0x10c   : > { %v556_v45 = vsub.f32 %v1169_v39, %v1172_v43  ;;  %757 = vst.msk [vmem:[#allocation2 + $0x8] sm:$0xff] %vm382_vm1, %v1172_v43  ;;  %v555_v46 = vsub.f32 %v535_v40, %v551_v44 }
 0x10d   : > { %756 = vst.msk [vmem:[#allocation2] sm:$0xff] %vm382_vm1, %v551_v44 }
 0x10e   : > { %v559_v47 = vmul.f32 1.442695, %v555_v46  ;;  %v561_v17 = vmul.f32 1.442695, %v556_v45 }
 0x110   : > { %v547_v50 = vpop.xlane.xlu0 %546  ;;  %1016 = vpow2.f32 %v559_v47 }
 0x111   : > { %v553_v51 = vmax.f32 %v537_v48, %v547_v50  ;;  %v550_v52 = vpop.xlane.xlu1 %549 }
 0x112   : > { %v554_v53 = vmax.f32 %v1179_v49, %v550_v52 }
 0x113   : > { %v557_v54 = vsub.f32 %v537_v48, %v553_v51  ;;  %758 = vst.msk [vmem:[#allocation2 + $0x10] sm:$0xff] %vm382_vm1, %v553_v51  ;;  %579 = vperm.xlu2 %1014, %v553_v51   ;;  %v602_v48 = vld [vmem:[#allocation3 + $0x18] sm:$0xff] }
 0x114   : > { %v558_v55 = vsub.f32 %v1179_v49, %v554_v53  ;;  %759 = vst.msk [vmem:[#allocation2 + $0x18] sm:$0xff] %vm382_vm1, %v554_v53  ;;  %584 = vperm.xlu1 %1015, %v554_v53  }
 0x115   : > { %v563_v56 = vmul.f32 1.442695, %v557_v54  ;;  %v629_v54 = vld [vmem:[#allocation4 + $0x8] sm:$0xff] }
 0x116   : > { %v1185_v57 = vpop.eup %1016  ;;  %v565_v20 = vmul.f32 1.442695, %v558_v55 }
 0x117   : > { %634 = vperm.xlu0 %1013, %v1185_v57   ;;  %1018 = vpow2.f32 %v563_v56  ;;  %v603_v30 = vmul.f32 %v1185_v57, %v599_v29 }
 0x11b   : > { %569 = vperm.xlu2 %1014, %v551_v44  }
 0x11d   : > { %v1019_v58 = vpop.eup %1018 }
 0x11f   : > { %644 = vperm.xlu0 %1013, %v1019_v58  }
 0x123   : > { %574 = vperm.xlu2 %1014, %v1172_v43  }
 0x16d   : > { %v580_v63 = vpop.permute.xlu2 %579 }
 0x16e   : > { %v589_v0 = vsub.f32 %v533_v34, %v580_v63  ;;  %v630_v34 = vld [vmem:[#allocation4 + $0x10] sm:$0xff] }
 0x170   : > { %v595_v1 = vmul.f32 1.442695, %v589_v0 }
 0x172   : > { %1020 = vpow2.f32 %v595_v1 }
 0x175   : > { %v570_v2 = vpop.permute.xlu2 %569 }
 0x176   : > { %v587_v3 = vsub.f32 %v1150_v27, %v570_v2 }
 0x178   : > { %v1021_v4 = vpop.eup %1020  ;;  %v591_v5 = vmul.f32 1.442695, %v587_v3 }
 0x179   : > { %978 = vmatmul.msk.f32.vlgmr.msrb.gmra.mxu2 %vm391_vm0, %v1021_v4  ;;  %v613_v6 = vsel %vm391_vm0, %v1021_v4, 0.0 }
 0x17a   : > { %1022 = vpow2.f32 %v591_v5  ;;  %614 = vadd.xlane.f32.xlu0 %v613_v6 }
 0x17d   : > { %v575_v7 = vpop.permute.xlu2 %574 }
 0x17e   : > { %v588_v8 = vsub.f32 %v1148_v26, %v575_v7  ;;  %v605_v26 = vmul.f32 %v1019_v58, %v601_v25 }
 0x180   : > { %v1023_v9 = vpop.eup %1022  ;;  %v593_v10 = vmul.f32 1.442695, %v588_v8 }
 0x181   : > { %976 = vmatmul.msk.f32.vlgmr.msrb.gmra.mxu0 %vm391_vm0, %v1023_v9  ;;  %v607_v11 = vsel %vm391_vm0, %v1023_v9, 0.0 }
 0x182   : > { %1024 = vpow2.f32 %v593_v10  ;;  %608 = vadd.xlane.f32.xlu1 %v607_v11 }
 0x186   : > { %v585_v12 = vpop.permute.xlu1 %584 }
 0x187   : > { %v590_v13 = vsub.f32 %v1156_v35, %v585_v12  ;;  %v600_v35 = vld [vmem:[#allocation3 + $0x8] sm:$0xff] }
 0x188   : > { %v1025_v14 = vpop.eup %1024 }
 0x189   : > { %v597_v15 = vmul.f32 1.442695, %v590_v13  ;;  %977 = vmatmul.msk.f32.vlgmr.msrb.gmra.mxu1 %vm391_vm0, %v1025_v14  ;;  %v610_v16 = vsel %vm391_vm0, %v1025_v14, 0.0  ;;  %v635_v23 = vpop.permute.xlu0 %634 }
 0x18a   : > { %611 = vadd.xlane.f32.xlu2 %v610_v16  ;;  %v652_v40 = vmul.f32 %v635_v23, %v628_v36 }
 0x18b   : > { %1026 = vpow2.f32 %v597_v15 }
 0x18c   : > { %1028 = vpow2.f32 %v561_v17 }
 0x18d   : > { %1030 = vpow2.f32 %v565_v20 }
 0x191   : > { %v1027_v18 = vpop.eup %1026  ;;  %v645_v24 = vpop.permute.xlu0 %644 }
 0x192   : > { %979 = vmatmul.msk.f32.vlgmr.msrb.gmra.mxu3 %vm391_vm0, %v1027_v18  ;;  %v616_v19 = vsel %vm391_vm0, %v1027_v18, 0.0  ;;  %v1029_v21 = vpop.eup %1028  ;;  %v654_v37 = vmul.f32 %v645_v24, %v630_v34 }
 0x193   : > { %617 = vadd.xlane.f32.xlu0 %v616_v19  ;;  %v1031_v22 = vpop.eup %1030  ;;  %v604_v39 = vmul.f32 %v1029_v21, %v600_v35 }
 0x194   : > { %v606_v49 = vmul.f32 %v1031_v22, %v602_v48 }
 0x19b   : > { %639 = vperm.xlu1 %1015, %v1029_v21  }
 0x1a2   : > { %649 = vperm.xlu2 %1014, %v1031_v22  }
 0x1ed   : > { %v615_v27 = vpop.xlane.xlu0 %614 }
 0x1ee   : > { %v621_v28 = vadd.f32 %v615_v27, %v605_v26 }
 0x1f0   : > { %626 = vst.msk [vmem:[#allocation3 + $0x10] sm:$0xff] %vm382_vm1, %v621_v28 }
 0x1f5   : > { %v609_v31 = vpop.xlane.xlu1 %608 }
 0x1f6   : > { %v619_v32 = vadd.f32 %v609_v31, %v603_v30 }
 0x1f7   : > { %v765_v33 = vld [vmem:[#allocation3 + $0x10] sm:$0xff] }
 0x1f8   : > { %624 = vst.msk [vmem:[#allocation3] sm:$0xff] %vm382_vm1, %v619_v32  ;;  %1032 = vrcp.f32 %v765_v33 }
 0x1fc   : > { %v722_v38 = vpop.f32.mrf.mxu2 }
 0x1fd   : > { %v750_v41 = vadd.f32 %v722_v38, %v654_v37  ;;  %v612_v42 = vpop.xlane.xlu2 %611 }
 0x1fe   : > { %v1033_v43 = vpop.eup %1032  ;;  %v620_v44 = vadd.f32 %v612_v42, %v604_v39  ;;  %v676_v45 = vpop.f32.mrf.mxu0 }
 0x1ff   : > { %754 = vst.msk [vmem:[#allocation4 + $0x10] sm:$0xff] %vm391_vm0, %v750_v41  ;;  %v748_v46 = vadd.f32 %v676_v45, %v652_v40  ;;  %787 = vperm.xlu1 %1015, %v1033_v43   ;;  %v763_v47 = vld [vmem:[#allocation3] sm:$0xff] }
 0x200   : > { %625 = vst.msk [vmem:[#allocation3 + $0x8] sm:$0xff] %vm382_vm1, %v620_v44  ;;  %1034 = vrcp.f32 %v763_v47 }
 0x201   : > { %752 = vst.msk [vmem:[#allocation4] sm:$0xff] %vm391_vm0, %v748_v46 }
 0x205   : > { %v650_v62 = vpop.permute.xlu2 %649 }
 0x206   : > { %v1035_v50 = vpop.eup %1034  ;;  %v618_v51 = vpop.xlane.xlu0 %617  ;;  %v655_v63 = vmul.f32 %v650_v62, %v631_v61  ;;  %v773_v3 = vld [vmem:[#allocation4 + $0x10] sm:$0xff] }
 0x207   : > { %v622_v52 = vadd.f32 %v618_v51, %v606_v49  ;;  %777 = vperm.xlu0 %1013, %v1035_v50   ;;  %v764_v53 = vld [vmem:[#allocation3 + $0x8] sm:$0xff]  ;;  %v699_v58 = vpop.f32.mrf.mxu1 }
 0x208   : > { %1036 = vrcp.f32 %v764_v53  ;;  %v771_v6 = vld [vmem:[#allocation4] sm:$0xff] }
 0x209   : > { %627 = vst.msk [vmem:[#allocation3 + $0x18] sm:$0xff] %vm382_vm1, %v622_v52 }
 0x20d   : > { %v640_v55 = vpop.permute.xlu1 %639 }
 0x20e   : > { %v1037_v56 = vpop.eup %1036  ;;  %v653_v57 = vmul.f32 %v640_v55, %v629_v54 }
 0x20f   : > { %782 = vperm.xlu0 %1013, %v1037_v56  }
 0x210   : > { %v749_v59 = vadd.f32 %v699_v58, %v653_v57  ;;  %v766_v60 = vld [vmem:[#allocation3 + $0x18] sm:$0xff] }
 0x211   : > { %1038 = vrcp.f32 %v766_v60 }
 0x212   : > { %753 = vst.msk [vmem:[#allocation4 + $0x8] sm:$0xff] %vm391_vm0, %v749_v59 }
 0x215   : > { %v745_v0 = vpop.f32.mrf.mxu3 }
 0x216   : > { %v751_v1 = vadd.f32 %v745_v0, %v655_v63 }
 0x217   : > { %v1039_v2 = vpop.eup %1038 }
 0x218   : > { %755 = vst.msk [vmem:[#allocation4 + $0x18] sm:$0xff] %vm391_vm0, %v751_v1  ;;  %792 = vperm.xlu0 %1013, %v1039_v2  }
 0x219   : > { %v772_v10 = vld [vmem:[#allocation4 + $0x8] sm:$0xff] }
 0x21f   : > { %v774_v12 = vld [vmem:[#allocation4 + $0x18] sm:$0xff] }
 0x271   : > { %v788_v4 = vpop.permute.xlu1 %787 }
 0x272   : > { %v797_v5 = vmul.f32 %v788_v4, %v773_v3 }
 0x274   : > { %801 = vst.msk [vmem:[%s377_s16 + $0x10] sm:$0xff] %vm391_vm0, %v797_v5 }
 0x279   : > { %v778_v7 = vpop.permute.xlu0 %777 }
 0x27a   : > { %v795_v8 = vmul.f32 %v778_v7, %v771_v6 }
 0x27c   : > { %799 = vst.msk [vmem:[%s377_s16] sm:$0xff] %vm391_vm0, %v795_v8 }
 0x281   : > { %v783_v9 = vpop.permute.xlu0 %782 }
 0x282   : > { %v796_v11 = vmul.f32 %v783_v9, %v772_v10 }
 0x284   : > { %800 = vst.msk [vmem:[%s377_s16 + $0x8] sm:$0xff] %vm391_vm0, %v796_v11 }
 0x28a   : > { %v793_v13 = vpop.permute.xlu0 %792 }
 0x28b   : > { %v798_v14 = vmul.f32 %v793_v13, %v774_v12 }
 0x28d   : > { %802 = vst.msk [vmem:[%s377_s16 + $0x18] sm:$0xff] %vm391_vm0, %v798_v14 }
 0x28e PF: > { %s15_s20 = sadd.s32 1, %s1062_s20   ;;  %s1236_s18 = smov %s1058_s19 }
 0x28f   : > { %p12_p5 = scmp.ge.s32.totalorder %s15_s20, 4   ;;  %s1237_s19 = smov %s1239_s21 }
 0x291   :  { %14 = sbr.rel (!%p12_p5) target bundleno = 2 (0x2), region = 90 }

</bundles_post_ra>
